<compile_context>
chip_gen: v6e
topology: v6e:2x2x1
jax: 0.10.0
libtpu: 0.0.40
codegen_flags: <defaults>
</compile_context>

<pallas_src>
import jax
import jax.numpy as jnp
import numpy as np
from jax.experimental import pallas as pl
from jax.experimental.pallas import tpu as pltpu


def make_mhfa_kernel(T, t_tile, H, C):
    """Build the per-(batch, time-tile) kernel; T / t_tile are static."""
    need_mask = (T % t_tile) != 0

    def kernel(x_ref, wka_ref, ba_ref, wv_ref, bv_ref, pool_ref,
               m_sc, l_sc, acc_sc):
        ti = pl.program_id(1)

        @pl.when(ti == 0)
        def _():
            m_sc[...] = jnp.full(m_sc.shape, -jnp.inf, dtype=m_sc.dtype)
            l_sc[...] = jnp.zeros(l_sc.shape, dtype=l_sc.dtype)
            acc_sc[...] = jnp.zeros(acc_sc.shape, dtype=acc_sc.dtype)

        xb = x_ref[0]                                   # [t_tile, L*D] (bf16)

        # Fused (layer-sum + compression + attention-head) matmuls, f32 accumulation.
        att = jnp.dot(xb, wka_ref[...],
                      preferred_element_type=jnp.float32) + ba_ref[...]   # [t, H]
        v = jnp.dot(xb, wv_ref[...],
                    preferred_element_type=jnp.float32) + bv_ref[...]     # [t, C]

        if need_mask:
            t0 = ti * t_tile
            rows_h = jax.lax.broadcasted_iota(jnp.int32, att.shape, 0) + t0
            att = jnp.where(rows_h < T, att, -1e30)
            rows_c = jax.lax.broadcasted_iota(jnp.int32, v.shape, 0) + t0
            v = jnp.where(rows_c < T, v, 0.0)

        # Online (flash-style) softmax over the time axis.
        m_prev = m_sc[...]                                                # [1, H]
        m_new = jnp.maximum(m_prev, jnp.max(att, axis=0, keepdims=True))  # [1, H]
        alpha = jnp.exp(m_prev - m_new)                                   # [1, H]
        p = jnp.exp(att - m_new)                                          # [t, H]

        l_sc[...] = alpha * l_sc[...] + jnp.sum(p, axis=0, keepdims=True)
        # acc[c, h] += sum_t v[t, c] * p[t, h]   (keeps broadcasts transpose-free)
        acc_sc[...] = alpha * acc_sc[...] + jax.lax.dot_general(
            v, p, (((0,), (0,)), ((), ())),
            preferred_element_type=jnp.float32)                           # [C, H]
        m_sc[...] = m_new

        @pl.when(ti == pl.num_programs(1) - 1)
        def _():
            inv_l = pl.reciprocal(l_sc[...], approx=True)                 # [1, H]
            pool_ref[0] = acc_sc[...] * inv_l                             # [C, H]

    return kernel


def mhfa_forward(x, params, *, t_tile=256, compute_dtype=jnp.bfloat16):
    """x: [B, D, T, L] (PyTorch layout). Returns [B, outputs_dim] (float32)."""
    B, D, T, L = x.shape
    C = params["Wk"].shape[0]          # compression_dim
    H = params["Wa"].shape[0]          # head_nb
    O = params["Wp"].shape[0]          # outputs_dim
    LD = L * D

    # ---- parameter prep (plain XLA glue, all tiny) ----
    wk_soft = jax.nn.softmax(params["weights_k"])              # [L]
    wv_soft = jax.nn.softmax(params["weights_v"])              # [L]

    # Fuse k-compression into the attention-head linear:  att = x_flat @ Wka_eff + ba_eff
    Wka = params["Wk"].T @ params["Wa"].T                      # [D, H]
    Wka_eff = (wk_soft[:, None, None] * Wka[None]).reshape(LD, H)
    ba_eff = (params["bk"] @ params["Wa"].T + params["ba"])[None, :]      # [1, H]

    # Fold the layer-softmax weights into the v compression weight.
    Wv_eff = (wv_soft[:, None, None] * params["Wv"].T[None]).reshape(LD, C)
    bv = params["bv"][None, :]                                            # [1, C]

    Wka_eff = Wka_eff.astype(compute_dtype)
    Wv_eff = Wv_eff.astype(compute_dtype)

    # [B, D, T, L] -> [B, T, L, D] -> [B, T, L*D]  (D lane-dense, L folded into K)
    xt = jnp.transpose(x, (0, 2, 3, 1)).reshape(B, T, LD).astype(compute_dtype)

    # Time tiling (second-to-last block dim must be a multiple of 8 or the full T).
    if T <= t_tile:
        tt = T
    else:
        tt = max(8, (t_tile // 8) * 8)
    nT = pl.cdiv(T, tt)

    kernel = make_mhfa_kernel(T, tt, H, C)

    pool = pl.pallas_call(
        kernel,
        out_shape=jax.ShapeDtypeStruct((B, C, H), jnp.float32),
        grid_spec=pltpu.PrefetchScalarGridSpec(
            num_scalar_prefetch=0,
            grid=(B, nT),
            in_specs=[
                pl.BlockSpec((1, tt, LD), lambda b, t: (b, t, 0)),   # x tile
                pl.BlockSpec((LD, H), lambda b, t: (0, 0)),          # fused k/att weight
                pl.BlockSpec((1, H), lambda b, t: (0, 0)),           # fused k/att bias
                pl.BlockSpec((LD, C), lambda b, t: (0, 0)),          # fused v weight
                pl.BlockSpec((1, C), lambda b, t: (0, 0)),           # v bias
            ],
            out_specs=pl.BlockSpec((1, C, H), lambda b, t: (b, 0, 0)),
            scratch_shapes=[
                pltpu.VMEM((1, H), jnp.float32),    # running max
                pltpu.VMEM((1, H), jnp.float32),    # running denom
                pltpu.VMEM((C, H), jnp.float32),    # running weighted sum
            ],
        ),
        compiler_params=pltpu.CompilerParams(
            dimension_semantics=("parallel", "arbitrary"),
            vmem_limit_bytes=48 * 1024 * 1024,
        ),
    )(xt, Wka_eff, ba_eff, Wv_eff, bv)

    # Final pooling FC in XLA as one lane-dense matmul.  pool is [B, C, H];
    # permute Wp so column index c*H + h matches PyTorch's row-major h*C + c flatten.
    Wp_perm = params["Wp"].T.reshape(H, C, O).transpose(1, 0, 2).reshape(C * H, O)
    return pool.reshape(B, C * H) @ Wp_perm + params["bp"][None, :]


def mhfa_reference(x, params):
    """Pure-JAX reference matching the PyTorch forward exactly (x: [B, D, T, L])."""
    wk = jax.nn.softmax(params["weights_k"])
    wv = jax.nn.softmax(params["weights_v"])
    k = jnp.sum(x * wk, axis=-1).transpose(0, 2, 1)            # [B, T, D]
    v = jnp.sum(x * wv, axis=-1).transpose(0, 2, 1)            # [B, T, D]
    k = k @ params["Wk"].T + params["bk"]                      # [B, T, C]
    v = v @ params["Wv"].T + params["bv"]                      # [B, T, C]
    att_k = k @ params["Wa"].T + params["ba"]                  # [B, T, H]
    att = jax.nn.softmax(att_k, axis=1)
    pool = jnp.einsum("bth,btc->bhc", att, v)                  # [B, H, C]
    flat = pool.reshape(x.shape[0], -1)
    return flat @ params["Wp"].T + params["bp"]                # [B, O]


if __name__ == "__main__":
    # Small, module-consistent shapes: x is [B, inputs_dim, T, 13]
    B, D, T, L = 2, 32, 8, 13       # inputs_dim=32, 13 transformer-layer features
    H, C, O = 8, 16, 32             # head_nb=8, compression_dim=16, outputs_dim=32

    key = jax.random.PRNGKey(0)
    kx, kx2, k1, k2, k3, k4, k5, k6, k7, k8 = jax.random.split(key, 10)

    x = jax.random.normal(kx, (B, D, T, L), dtype=jnp.float32)

    params = {
        "weights_k": jnp.ones((L,), dtype=jnp.float32),
        "weights_v": jnp.ones((L,), dtype=jnp.float32),
        # nn.Linear weights are (out_features, in_features)
        "Wk": 0.1 * jax.random.normal(k1, (C, D), dtype=jnp.float32),
        "bk": 0.1 * jax.random.normal(k2, (C,), dtype=jnp.float32),
        "Wv": 0.1 * jax.random.normal(k3, (C, D), dtype=jnp.float32),
        "bv": 0.1 * jax.random.normal(k4, (C,), dtype=jnp.float32),
        "Wa": 0.1 * jax.random.normal(k5, (H, C), dtype=jnp.float32),
        "ba": 0.1 * jax.random.normal(k6, (H,), dtype=jnp.float32),
        "Wp": 0.1 * jax.random.normal(k7, (O, H * C), dtype=jnp.float32),
        "bp": 0.1 * jax.random.normal(k8, (O,), dtype=jnp.float32),
    }

    # Case 1: T fits one tile (T == t_tile path).
    out = jax.block_until_ready(mhfa_forward(x, params))
    ref = jax.block_until_ready(mhfa_reference(x, params))
    assert out.shape == (B, O), out.shape
    np.testing.assert_allclose(np.asarray(out), np.asarray(ref), rtol=2e-2, atol=2e-2)

    # Case 2: exercise the T-tiled online softmax with a partial (masked) last tile.
    T2 = 19
    x2 = jax.random.normal(kx2, (B, D, T2, L), dtype=jnp.float32)
    out2 = jax.block_until_ready(mhfa_forward(x2, params, t_tile=8))
    ref2 = jax.block_until_ready(mhfa_reference(x2, params))
    np.testing.assert_allclose(np.asarray(out2), np.asarray(ref2), rtol=2e-2, atol=2e-2)

    print("KERNEL_OK")
</pallas_src>

<mosaic_0001>
module attributes {stable_mosaic.version = 11 : i64} {
  func.func @kernel(%arg0: i32, %arg1: i32, %arg2: memref<1x8x416xbf16, #tpu.memory_space<vmem>>, %arg3: memref<416x8xbf16, #tpu.memory_space<vmem>>, %arg4: memref<1x8xf32, #tpu.memory_space<vmem>>, %arg5: memref<416x16xbf16, #tpu.memory_space<vmem>>, %arg6: memref<1x16xf32, #tpu.memory_space<vmem>>, %arg7: memref<1x16x8xf32, #tpu.memory_space<vmem>>, %arg8: memref<1x8xf32, #tpu.memory_space<vmem>>, %arg9: memref<1x8xf32, #tpu.memory_space<vmem>>, %arg10: memref<16x8xf32, #tpu.memory_space<vmem>>) attributes {dimension_semantics = [#tpu.dimension_semantics<parallel>, #tpu.dimension_semantics<arbitrary>], iteration_bounds = array<i64: 2, 1>, scalar_prefetch = 0 : i64, scratch_operands = 3 : i64, tpu.core_type = #tpu.core_type<tc>, window_params = [{transform_indices = @transform_0, window_bounds = array<i64: 1, 8, 416>}, {pipeline_mode = #tpu.pipeline_mode<synchronous>, transform_indices = @transform_1, window_bounds = array<i64: 416, 8>}, {pipeline_mode = #tpu.pipeline_mode<synchronous>, transform_indices = @transform_2, window_bounds = array<i64: 1, 8>}, {pipeline_mode = #tpu.pipeline_mode<synchronous>, transform_indices = @transform_3, window_bounds = array<i64: 416, 16>}, {pipeline_mode = #tpu.pipeline_mode<synchronous>, transform_indices = @transform_4, window_bounds = array<i64: 1, 16>}, {transform_indices = @transform_5, window_bounds = array<i64: 1, 16, 8>}]} {
    %c0_i32 = arith.constant 0 : i32
    %0 = arith.cmpi eq, %arg1, %c0_i32 : i32
    %1 = arith.extui %0 : i1 to i32
    %c0_i32_0 = arith.constant 0 : i32
    %2 = arith.cmpi ne, %1, %c0_i32_0 : i32
    scf.if %2 {
      %cst_29 = arith.constant 0xFF800000 : f32
      %40 = vector.broadcast %cst_29 : f32 to vector<1x8xf32>
      %c0_30 = arith.constant 0 : index
      %c0_31 = arith.constant 0 : index
      %41 = vector.load %arg8[%c0_30, %c0_31] : memref<1x8xf32, #tpu.memory_space<vmem>>, vector<1x8xf32>
      tpu.vector_store %arg8[%c0_30, %c0_31], %40 {strides = array<i32>} : memref<1x8xf32, #tpu.memory_space<vmem>>, vector<1x8xf32>,
      %cst_32 = arith.constant 0.000000e+00 : f32
      %42 = vector.broadcast %cst_32 : f32 to vector<1x8xf32>
      %c0_33 = arith.constant 0 : index
      %c0_34 = arith.constant 0 : index
      %43 = vector.load %arg9[%c0_33, %c0_34] : memref<1x8xf32, #tpu.memory_space<vmem>>, vector<1x8xf32>
      tpu.vector_store %arg9[%c0_33, %c0_34], %42 {strides = array<i32>} : memref<1x8xf32, #tpu.memory_space<vmem>>, vector<1x8xf32>,
      %cst_35 = arith.constant 0.000000e+00 : f32
      %44 = vector.broadcast %cst_35 : f32 to vector<16x8xf32>
      %c0_36 = arith.constant 0 : index
      %c0_37 = arith.constant 0 : index
      %45 = vector.load %arg10[%c0_36, %c0_37] : memref<16x8xf32, #tpu.memory_space<vmem>>, vector<16x8xf32>
      tpu.vector_store %arg10[%c0_36, %c0_37], %44 {strides = array<i32>} : memref<16x8xf32, #tpu.memory_space<vmem>>, vector<16x8xf32>,
    } else {
    }
    %c0 = arith.constant 0 : index
    %c0_1 = arith.constant 0 : index
    %c0_2 = arith.constant 0 : index
    %3 = vector.load %arg2[%c0, %c0_1, %c0_2] : memref<1x8x416xbf16, #tpu.memory_space<vmem>>, vector<1x8x416xbf16>
    %4 = vector.shape_cast %3 : vector<1x8x416xbf16> to vector<8x416xbf16>
    %c0_3 = arith.constant 0 : index
    %c0_4 = arith.constant 0 : index
    %5 = vector.load %arg3[%c0_3, %c0_4] : memref<416x8xbf16, #tpu.memory_space<vmem>>, vector<416x8xbf16>
    %cst = arith.constant dense<0.000000e+00> : vector<8x8xf32>
    %6 = tpu.matmul %4, %5, %cst {dimension_numbers = #tpu.dot_dimension_numbers<[1], [0], [0], [1], [0, 0, 1, 1], [], []>} : vector<8x416xbf16>, vector<416x8xbf16>, vector<8x8xf32> -> vector<8x8xf32>
    %c0_5 = arith.constant 0 : index
    %c0_6 = arith.constant 0 : index
    %7 = vector.load %arg4[%c0_5, %c0_6] : memref<1x8xf32, #tpu.memory_space<vmem>>, vector<1x8xf32>
    %8 = vector.broadcast %7 : vector<1x8xf32> to vector<8x8xf32>
    %9 = arith.addf %6, %8 : vector<8x8xf32>
    %c0_7 = arith.constant 0 : index
    %c0_8 = arith.constant 0 : index
    %10 = vector.load %arg5[%c0_7, %c0_8] : memref<416x16xbf16, #tpu.memory_space<vmem>>, vector<416x16xbf16>
    %cst_9 = arith.constant dense<0.000000e+00> : vector<8x16xf32>
    %11 = tpu.matmul %4, %10, %cst_9 {dimension_numbers = #tpu.dot_dimension_numbers<[1], [0], [0], [1], [0, 0, 1, 1], [], []>} : vector<8x416xbf16>, vector<416x16xbf16>, vector<8x16xf32> -> vector<8x16xf32>
    %c0_10 = arith.constant 0 : index
    %c0_11 = arith.constant 0 : index
    %12 = vector.load %arg6[%c0_10, %c0_11] : memref<1x16xf32, #tpu.memory_space<vmem>>, vector<1x16xf32>
    %13 = vector.broadcast %12 : vector<1x16xf32> to vector<8x16xf32>
    %14 = arith.addf %11, %13 : vector<8x16xf32>
    %c0_12 = arith.constant 0 : index
    %c0_13 = arith.constant 0 : index
    %15 = vector.load %arg8[%c0_12, %c0_13] : memref<1x8xf32, #tpu.memory_space<vmem>>, vector<1x8xf32>
    %cst_14 = arith.constant dense<0xFF800000> : vector<8xf32>
    %16 = vector.multi_reduction <maximumf>, %9, %cst_14 [0] : vector<8x8xf32> to vector<8xf32>
    %17 = vector.shape_cast %16 : vector<8xf32> to vector<1x8xf32>
    %18 = arith.maximumf %15, %17 : vector<1x8xf32>
    %19 = arith.subf %15, %18 : vector<1x8xf32>
    %20 = math.exp %19 : vector<1x8xf32>
    %21 = vector.broadcast %18 : vector<1x8xf32> to vector<8x8xf32>
    %22 = arith.subf %9, %21 : vector<8x8xf32>
    %23 = math.exp %22 : vector<8x8xf32>
    %c0_15 = arith.constant 0 : index
    %c0_16 = arith.constant 0 : index
    %24 = vector.load %arg9[%c0_15, %c0_16] : memref<1x8xf32, #tpu.memory_space<vmem>>, vector<1x8xf32>
    %25 = arith.mulf %20, %24 : vector<1x8xf32>
    %cst_17 = arith.constant dense<0.000000e+00> : vector<8xf32>
    %26 = vector.multi_reduction <add>, %23, %cst_17 [0] : vector<8x8xf32> to vector<8xf32>
    %27 = vector.shape_cast %26 : vector<8xf32> to vector<1x8xf32>
    %28 = arith.addf %25, %27 : vector<1x8xf32>
    %c0_18 = arith.constant 0 : index
    %c0_19 = arith.constant 0 : index
    %29 = vector.load %arg9[%c0_18, %c0_19] : memref<1x8xf32, #tpu.memory_space<vmem>>, vector<1x8xf32>
    tpu.vector_store %arg9[%c0_18, %c0_19], %28 {strides = array<i32>} : memref<1x8xf32, #tpu.memory_space<vmem>>, vector<1x8xf32>,
    %c0_20 = arith.constant 0 : index
    %c0_21 = arith.constant 0 : index
    %30 = vector.load %arg10[%c0_20, %c0_21] : memref<16x8xf32, #tpu.memory_space<vmem>>, vector<16x8xf32>
    %31 = vector.broadcast %20 : vector<1x8xf32> to vector<16x8xf32>
    %32 = arith.mulf %31, %30 : vector<16x8xf32>
    %cst_22 = arith.constant dense<0.000000e+00> : vector<16x8xf32>
    %33 = tpu.matmul %14, %23, %cst_22 {dimension_numbers = #tpu.dot_dimension_numbers<[0], [0], [1], [1], [0, 1, 1, 1], [], []>} : vector<8x16xf32>, vector<8x8xf32>, vector<16x8xf32> -> vector<16x8xf32>
    %34 = arith.addf %32, %33 : vector<16x8xf32>
    %c0_23 = arith.constant 0 : index
    %c0_24 = arith.constant 0 : index
    %35 = vector.load %arg10[%c0_23, %c0_24] : memref<16x8xf32, #tpu.memory_space<vmem>>, vector<16x8xf32>
    tpu.vector_store %arg10[%c0_23, %c0_24], %34 {strides = array<i32>} : memref<16x8xf32, #tpu.memory_space<vmem>>, vector<16x8xf32>,
    %c0_25 = arith.constant 0 : index
    %c0_26 = arith.constant 0 : index
    %36 = vector.load %arg8[%c0_25, %c0_26] : memref<1x8xf32, #tpu.memory_space<vmem>>, vector<1x8xf32>
    tpu.vector_store %arg8[%c0_25, %c0_26], %18 {strides = array<i32>} : memref<1x8xf32, #tpu.memory_space<vmem>>, vector<1x8xf32>,
    %c0_i32_27 = arith.constant 0 : i32
    %37 = arith.cmpi eq, %arg1, %c0_i32_27 : i32
    %38 = arith.extui %37 : i1 to i32
    %c0_i32_28 = arith.constant 0 : i32
    %39 = arith.cmpi ne, %38, %c0_i32_28 : i32
    scf.if %39 {
      %c0_29 = arith.constant 0 : index
      %c0_30 = arith.constant 0 : index
      %40 = vector.load %arg9[%c0_29, %c0_30] : memref<1x8xf32, #tpu.memory_space<vmem>>, vector<1x8xf32>
      %41 = tpu.reciprocal %40 {approx = true} : vector<1x8xf32> -> vector<1x8xf32>
      %c0_31 = arith.constant 0 : index
      %c0_32 = arith.constant 0 : index
      %42 = vector.load %arg10[%c0_31, %c0_32] : memref<16x8xf32, #tpu.memory_space<vmem>>, vector<16x8xf32>
      %43 = vector.broadcast %41 : vector<1x8xf32> to vector<16x8xf32>
      %44 = arith.mulf %42, %43 : vector<16x8xf32>
      %c0_33 = arith.constant 0 : index
      %c0_34 = arith.constant 0 : index
      %c0_35 = arith.constant 0 : index
      %45 = vector.load %arg7[%c0_33, %c0_34, %c0_35] : memref<1x16x8xf32, #tpu.memory_space<vmem>>, vector<1x16x8xf32>
      %46 = vector.shape_cast %45 : vector<1x16x8xf32> to vector<16x8xf32>
      %47 = vector.shape_cast %44 : vector<16x8xf32> to vector<1x16x8xf32>
      tpu.vector_store %arg7[%c0_33, %c0_34, %c0_35], %47 {strides = array<i32>} : memref<1x16x8xf32, #tpu.memory_space<vmem>>, vector<1x16x8xf32>,
    } else {
    }
    return
  }
  func.func @transform_0(%arg0: i32, %arg1: i32) -> (i32, i32, i32) {
    %c0_i32 = arith.constant 0 : i32
    %c0_i32_0 = arith.constant 0 : i32
    return %arg0, %arg1, %c0_i32 : i32, i32, i32
  }
  func.func @transform_1(%arg0: i32, %arg1: i32) -> (i32, i32) {
    %c0_i32 = arith.constant 0 : i32
    %c0_i32_0 = arith.constant 0 : i32
    %c0_i32_1 = arith.constant 0 : i32
    return %c0_i32, %c0_i32_0 : i32, i32
  }
  func.func @transform_2(%arg0: i32, %arg1: i32) -> (i32, i32) {
    %c0_i32 = arith.constant 0 : i32
    %c0_i32_0 = arith.constant 0 : i32
    %c0_i32_1 = arith.constant 0 : i32
    return %c0_i32, %c0_i32_0 : i32, i32
  }
  func.func @transform_3(%arg0: i32, %arg1: i32) -> (i32, i32) {
    %c0_i32 = arith.constant 0 : i32
    %c0_i32_0 = arith.constant 0 : i32
    %c0_i32_1 = arith.constant 0 : i32
    return %c0_i32, %c0_i32_0 : i32, i32
  }
  func.func @transform_4(%arg0: i32, %arg1: i32) -> (i32, i32) {
    %c0_i32 = arith.constant 0 : i32
    %c0_i32_0 = arith.constant 0 : i32
    %c0_i32_1 = arith.constant 0 : i32
    return %c0_i32, %c0_i32_0 : i32, i32
  }
  func.func @transform_5(%arg0: i32, %arg1: i32) -> (i32, i32, i32) {
    %c0_i32 = arith.constant 0 : i32
    %c0_i32_0 = arith.constant 0 : i32
    %c0_i32_1 = arith.constant 0 : i32
    return %arg0, %c0_i32, %c0_i32_0 : i32, i32, i32
  }
}

</mosaic_0001>

<bundles_post_ra>
// kernel: tpu_custom_call.1
= control target key start
LH: loop header
LB: loop body
LE: loop exit
PB: predicated region body
PF: predicated region fallthrough
CT: control target
= control target key end

     0   :  { %s1395_s18 = smov 0   ;;  %s1397_s19 = smov 0   ;;  %s1641_s0 = inlined_call_operand.vmem [shape: bf16[2,8,416], index: 0, kind: input, shape index: {}]   ;;  %s1642_s1 = inlined_call_operand.vmem [shape: bf16[416,8], index: 1, kind: input, shape index: {}]   ;;  %s1643_s2 = inlined_call_operand.vmem [shape: f32[1,8], index: 2, kind: input, shape index: {}]   ;;  %s1644_s3 = inlined_call_operand.vmem [shape: bf16[416,16], index: 3, kind: input, shape index: {}]   ;;  %s1645_s4 = inlined_call_operand.vmem [shape: f32[1,16], index: 4, kind: input, shape index: {}]   ;;  %s1646_s5 = inlined_call_operand.vmem [shape: f32[2,16,8], index: 5, kind: output, shape index: {}]  }
   0x1   :  { %s1399_s20 = smov 0  }
   0x2 LB: > { %s27_s21 = sadd.s32 1, %s1356_s19  ;;  %p1126_p0 = scmp.ge.s32.totalorder %s1360_s20, 1  ;;  %s1360_s20 = sphi %s1399_s20, %s15_s20   ;;  %s1356_s19 = sphi %s1397_s19, %s1648_s19   ;;  %s1352_s18 = sphi %s1395_s18, %s1647_s18  }
   0x3   : > { %p29_p1 = scmp.ge.s32.totalorder %s27_s21, 2  ;;  %p205_p2 = scmp.lt.s32.totalorder %s1360_s20, 3 }
   0x5   : > { %s1650_s21 = smov (%p29_p1, %s27_s21), 0  ;;  %p206_p3 = pnand %p1126_p0, %p205_p2 }
   0x6   : > { %p237_p4 = scmp.lt.s32.totalorder (!%p206_p3), %s1352_s18, 1 }
   0x7   : > { %209 = sbr.rel (%p206_p3) target bundleno = 625 (0x271), region = 40 }
   0xc   : > { %v1276_v0 = vld [vmem:[%s1642_s1 + $0xb8] sm:$0xff]   ;;  %v1362_v1 = vmov 0   ;;  %v1279_v4 = vld [vmem:[%s1642_s1 + $0xb0] sm:$0xff]   ;;  %v1282_v7 = vld [vmem:[%s1642_s1 + $0xa8] sm:$0xff]   ;;  %s1652_s18 = smov (!%p237_p4, %s1352_s18), 1  ;;  %vm492_vm0 = vcmask 261120  }
   0xd   : > { %536 = vmatprep.subr.bf16.mxu1 %v1362_v1  ;;  %v1277_v2 = vld [vmem:[%s1642_s1 + $0x78] sm:$0xff]   ;;  %v1280_v5 = vld [vmem:[%s1642_s1 + $0x70] sm:$0xff]   ;;  %v1283_v8 = vld [vmem:[%s1642_s1 + $0x68] sm:$0xff]   ;;  %s1195_s10 = sshll.u32 %s1652_s18, 4  ;;  %vm256_vm1 = vcmask 57344   ;;  %vm259_vm2 = vcmask 64512  }
   0xe   : > { %537 = vmatpush1.bf16.msra.mxu1 %v1276_v0  ;;  %v1278_v3 = vld [vmem:[%s1642_s1 + $0x38] sm:$0xff]   ;;  %1197 = vmatprep.subr.bf16.mxu0 %v1277_v2  ;;  %v1281_v6 = vld [vmem:[%s1642_s1 + $0x30] sm:$0xff]   ;;  %v1284_v9 = vld [vmem:[%s1642_s1 + $0x28] sm:$0xff]   ;;  %s245_s17 = scalar_lea.vmem %s1641_s0, %s1195_s10  ;;  %v1363_v59 = vmov -inf   ;;  %v1364_v60 = vmov 0.0   ;;  %s250_s9 = scalar_lea.vmem %s1646_s5, %s1195_s10 }
   0xf   : > { %538 = vmatprep.subr.bf16.mxu1 %v1362_v1  ;;  %1198 = vmatpush3.bf16.msra.mxu0 %v1278_v3  ;;  %v1285_v10 = vld [vmem:[%s1642_s1 + $0xa0] sm:$0xff]   ;;  %v1289_v13 = vld [vmem:[%s1642_s1 + $0x58] sm:$0xff]   ;;  %v1292_v16 = vld [vmem:[%s1642_s1 + $0x50] sm:$0xff]   ;;  %257 = vst.msk [vmem:[#allocation2] sm:$0x1] %vm256_vm1, %v1363_v59 }
  0x10   : > { %1199 = vmatprep.subr.bf16.mxu0 %v1280_v5  ;;  %v1286_v11 = vld [vmem:[%s1642_s1 + $0x60] sm:$0xff]   ;;  %v1288_v14 = vld [vmem:[%s1642_s1 + $0x98] sm:$0xff]   ;;  %v1291_v17 = vld [vmem:[%s1642_s1 + $0x90] sm:$0xff]   ;;  %258 = vst.msk [vmem:[#allocation3] sm:$0x1] %vm256_vm1, %v1364_v60 }
  0x11   : > { %v1287_v12 = vld [vmem:[%s1642_s1 + $0x20] sm:$0xff]   ;;  %v1290_v15 = vld [vmem:[%s1642_s1 + $0x18] sm:$0xff]   ;;  %v1293_v18 = vld [vmem:[%s1642_s1 + $0x10] sm:$0xff]   ;;  %260 = vst.msk [vmem:[#allocation4] sm:$0xff] %vm259_vm2, %v1364_v60 }
  0x12   : > { %539 = vmatpush1.bf16.msra.mxu1 %v1279_v4  ;;  %v1295_v19 = vld [vmem:[%s1642_s1 + $0x48] sm:$0xff]   ;;  %v262_v22 = vld [vmem:[%s245_s17] sm:$0xff]  ;;  %v1303_v28 = vld [vmem:[%s1644_s3 + $0x78] sm:$0xff]   ;;  %261 = vst.msk [vmem:[#allocation4 + $0x8] sm:$0xff] %vm259_vm2, %v1364_v60 }
  0x13   : > { %540 = vmatprep.subr.bf16.mxu1 %v1362_v1  ;;  %1200 = vmatpush3.bf16.msra.mxu0 %v1281_v6  ;;  %v1294_v20 = vld [vmem:[%s1642_s1 + $0x88] sm:$0xff]   ;;  %v1298_v23 = vld [vmem:[%s1642_s1 + $0x40] sm:$0xff]   ;;  %v1133_v24 = vcombine.high %v262_v22, %v262_v22  ;;  %v1512_v31 = vcombine.low %v262_v22, %v262_v22  ;;  %v1305_v32 = vld [vmem:[%s1644_s3 + $0x38] sm:$0xff]  }
  0x14   : > { %1201 = vmatprep.subr.bf16.mxu0 %v1283_v8  ;;  %v1296_v21 = vld [vmem:[%s1642_s1 + $0x8] sm:$0xff]   ;;  %v1297_v25 = vld [vmem:[%s1642_s1 + $0x80] sm:$0xff]   ;;  %v1308_v33 = vld [vmem:[%s1644_s3 + $0x70] sm:$0xff]  }
  0x15   : > { %528 = vmatprep.mubr.bf16.mxu0 %v1133_v24  ;;  %v1299_v26 = vld [vmem:[%s1642_s1] sm:$0xff]   ;;  %v263_v27 = vld [vmem:[%s245_s17 + $0x8] sm:$0xff]  ;;  %v1309_v35 = vld [vmem:[%s1644_s3 + $0x30] sm:$0xff]  }
  0x16   : > { %541 = vmatpush1.bf16.msra.mxu1 %v1282_v7  ;;  %v1135_v29 = vcombine.high %v263_v27, %v263_v27  ;;  %v1302_v30 = vld [vmem:[%s1642_s1 + $0xc8] sm:$0xff]   ;;  %v1304_v34 = vld [vmem:[%s1642_s1 + $0xc0] sm:$0xff]   ;;  %v1134_v36 = vcombine.low %v263_v27, %v263_v27  ;;  %v1310_v38 = vld [vmem:[%s1644_s3 + $0xb8] sm:$0xff]  }
  0x17   : > { %542 = vmatprep.subr.bf16.mxu1 %v1362_v1  ;;  %1202 = vmatpush3.bf16.msra.mxu0 %v1284_v9  ;;  %v1311_v37 = vld [vmem:[%s1644_s3 + $0x68] sm:$0xff]   ;;  %v1314_v40 = vld [vmem:[%s1644_s3 + $0x60] sm:$0xff]   ;;  %v1313_v41 = vld [vmem:[%s1644_s3 + $0xb0] sm:$0xff]  }
  0x18   : > { %1203 = vmatprep.subr.bf16.mxu0 %v1286_v11  ;;  %1162 = vmatprep.mubr.msk.bf16.mxu1 %vm492_vm0, %v1135_v29  ;;  %v1312_v39 = vld [vmem:[%s1644_s3 + $0x28] sm:$0xff]   ;;  %v1315_v42 = vld [vmem:[%s1644_s3 + $0x20] sm:$0xff]   ;;  %v1317_v43 = vld [vmem:[%s1644_s3 + $0x58] sm:$0xff]   ;;  %v885_v11 = vlaneseq }
  0x19   : > { %v1316_v44 = vld [vmem:[%s1644_s3 + $0xa8] sm:$0xff]   ;;  %v1318_v45 = vld [vmem:[%s1644_s3 + $0x18] sm:$0xff]   ;;  %v1320_v46 = vld [vmem:[%s1644_s3 + $0x50] sm:$0xff]  }
  0x1a   : > { %543 = vmatpush1.bf16.msra.mxu1 %v1285_v10  ;;  %v1319_v47 = vld [vmem:[%s1644_s3 + $0xa0] sm:$0xff]   ;;  %v1321_v48 = vld [vmem:[%s1644_s3 + $0x10] sm:$0xff]   ;;  %v1323_v49 = vld [vmem:[%s1644_s3 + $0x48] sm:$0xff]  }
  0x1b   : > { %544 = vmatprep.subr.bf16.mxu1 %v1362_v1  ;;  %1204 = vmatpush3.bf16.msra.mxu0 %v1287_v12  ;;  %v1322_v50 = vld [vmem:[%s1644_s3 + $0x98] sm:$0xff]   ;;  %v1324_v51 = vld [vmem:[%s1644_s3 + $0x8] sm:$0xff]   ;;  %v1326_v52 = vld [vmem:[%s1644_s3 + $0x40] sm:$0xff]  }
  0x1c   : > { %1205 = vmatprep.subr.bf16.mxu0 %v1289_v13  ;;  %v1325_v53 = vld [vmem:[%s1644_s3 + $0x90] sm:$0xff]   ;;  %v1327_v54 = vld [vmem:[%s1644_s3] sm:$0xff]   ;;  %v1328_v55 = vld [vmem:[%s1644_s3 + $0x88] sm:$0xff]  }
  0x1d   : > { %v1329_v56 = vld [vmem:[%s1644_s3 + $0x80] sm:$0xff]   ;;  %v1330_v57 = vld [vmem:[%s1644_s3 + $0xc8] sm:$0xff]  }
  0x1e   : > { %545 = vmatpush1.bf16.msra.mxu1 %v1288_v14  ;;  %v1331_v58 = vld [vmem:[%s1644_s3 + $0xc0] sm:$0xff]  }
  0x1f   : > { %546 = vmatprep.subr.bf16.mxu1 %v1362_v1  ;;  %1206 = vmatpush3.bf16.msra.mxu0 %v1290_v15  ;;  %v1131_v63 = vld [vmem:[%s1643_s2] ss:$0 sm:$0xff]  ;;  %v886_v15 = vshrl.u32 %v885_v11, 7 }
  0x20   : > { %1207 = vmatprep.subr.bf16.mxu0 %v1292_v16 }
  0x22   : > { %547 = vmatpush1.bf16.msra.mxu1 %v1291_v17  ;;  %v871_v17 = vld [vmem:[#allocation2] sm:$0x1] }
  0x23   : > { %548 = vmatprep.subr.bf16.mxu1 %v1362_v1  ;;  %1208 = vmatpush3.bf16.msra.mxu0 %v1293_v18 }
  0x24   : > { %1209 = vmatprep.subr.bf16.mxu0 %v1295_v19  ;;  %v887_v19 = vsub.s32 0, %v886_v15 }
  0x26   : > { %549 = vmatpush1.bf16.msra.mxu1 %v1294_v20 }
  0x27   : > { %550 = vmatprep.subr.bf16.mxu1 %v1362_v1  ;;  %1210 = vmatpush3.bf16.msra.mxu0 %v1296_v21 }
  0x28   : > { %1211 = vmatprep.subr.bf16.mxu0 %v1298_v23 }
  0x2a   : > { %551 = vmatpush1.bf16.msra.mxu1 %v1297_v25 }
  0x2b   : > { %564 = vmatprep.subr.bf16.mxu1 %v1362_v1  ;;  %1212 = vmatpush3.bf16.msra.mxu0 %v1299_v26 }
  0x2c   : > { %1219 = vmatprep.subr.bf16.mxu0 %v1303_v28 }
  0x2e   : > { %565 = vmatpush2.bf16.msra.mxu1 %v1302_v30  ;;  %529 = vmatmul.mubr.bf16.vlgmr.msra.gmra.mxu0 %v1512_v31 }
  0x2f   : > { %566 = vmatprep.subr.bf16.mxu1 %v1362_v1  ;;  %1220 = vmatpush3.bf16.msra.mxu0 %v1305_v32  ;;  %v1163_v32 = vld [vmem:[%s1645_s4] ss:$0 sm:$0xff] }
  0x30   : > { %823 = vmatprep.mubr.bf16.mxu0 %v1133_v24  ;;  %1221 = vmatprep.subr.bf16.mxu0 %v1308_v33 }
  0x32   : > { %567 = vmatpush2.bf16.msra.mxu1 %v1304_v34 }
  0x33   : > { %831 = vmatprep.subr.bf16.mxu1 %v1362_v1  ;;  %1222 = vmatpush3.bf16.msra.mxu0 %v1309_v35 }
  0x34   : > { %1223 = vmatprep.subr.bf16.mxu0 %v1311_v37 }
  0x35   : > { %569 = vmatmul.mubr.bf16.vlgmr.msra.gmra.mxu1 %v1134_v36 }
  0x36   : > { %832 = vmatpush1.bf16.msra.mxu1 %v1310_v38  ;;  %1190 = vmatprep.mubr.msk.bf16.mxu1 %vm492_vm0, %v1135_v29 }
  0x37   : > { %833 = vmatprep.subr.bf16.mxu1 %v1362_v1  ;;  %1224 = vmatpush3.bf16.msra.mxu0 %v1312_v39 }
  0x38   : > { %1225 = vmatprep.subr.bf16.mxu0 %v1314_v40 }
  0x3a   : > { %834 = vmatpush1.bf16.msra.mxu1 %v1313_v41 }
  0x3b   : > { %835 = vmatprep.subr.bf16.mxu1 %v1362_v1  ;;  %1226 = vmatpush3.bf16.msra.mxu0 %v1315_v42 }
  0x3c   : > { %1227 = vmatprep.subr.bf16.mxu0 %v1317_v43 }
  0x3e   : > { %836 = vmatpush1.bf16.msra.mxu1 %v1316_v44 }
  0x3f   : > { %837 = vmatprep.subr.bf16.mxu1 %v1362_v1  ;;  %1228 = vmatpush3.bf16.msra.mxu0 %v1318_v45  ;;  %v893_v45 = vld [vmem:[#allocation3] sm:$0x1] }
  0x40   : > { %1229 = vmatprep.subr.bf16.mxu0 %v1320_v46 }
  0x42   : > { %838 = vmatpush1.bf16.msra.mxu1 %v1319_v47 }
  0x43   : > { %839 = vmatprep.subr.bf16.mxu1 %v1362_v1  ;;  %1230 = vmatpush3.bf16.msra.mxu0 %v1321_v48 }
  0x44   : > { %1231 = vmatprep.subr.bf16.mxu0 %v1323_v49 }
  0x46   : > { %840 = vmatpush1.bf16.msra.mxu1 %v1322_v50 }
  0x47   : > { %841 = vmatprep.subr.bf16.mxu1 %v1362_v1  ;;  %1232 = vmatpush3.bf16.msra.mxu0 %v1324_v51 }
  0x48   : > { %1233 = vmatprep.subr.bf16.mxu0 %v1326_v52 }
  0x4a   : > { %842 = vmatpush1.bf16.msra.mxu1 %v1325_v53 }
  0x4b   : > { %843 = vmatprep.subr.bf16.mxu1 %v1362_v1  ;;  %1234 = vmatpush3.bf16.msra.mxu0 %v1327_v54  ;;  %v906_v54 = vld [vmem:[#allocation4 + $0x8] sm:$0xff] }
  0x4e   : > { %844 = vmatpush1.bf16.msra.mxu1 %v1328_v55  ;;  %824 = vmatmul.mubr.bf16.vlgmr.msra.gmra.mxu0 %v1512_v31  ;;  %v905_v55 = vld [vmem:[#allocation4] sm:$0xff] }
  0x4f   : > { %845 = vmatprep.subr.bf16.mxu1 %v1362_v1 }
  0x52   : > { %846 = vmatpush1.bf16.msra.mxu1 %v1329_v56 }
  0x53   : > { %859 = vmatprep.subr.bf16.mxu1 %v1362_v1 }
  0x56   : > { %860 = vmatpush2.bf16.msra.mxu1 %v1330_v57 }
  0x57   : > { %861 = vmatprep.subr.bf16.mxu1 %v1362_v1 }
  0x5a   : > { %862 = vmatpush2.bf16.msra.mxu1 %v1331_v58 }
  0x5d   : > { %864 = vmatmul.mubr.bf16.vlgmr.msra.gmra.mxu1 %v1134_v36 }
  0xee   : > { %v1213_v61 = vpop.f32.mrf.mxu0 }
  0xf0   : > { %v1214_v62 = vpop.f32.mrf.mxu0 }
  0xf1   : > { %v1215_v0 = vadd.f32 %v1214_v62, %v1213_v61 }
  0xf2   : > { %v1216_v1 = vpop.f32.mrf.mxu0 }
  0xf3   : > { %v531_v2 = vadd.f32 %v1215_v0, %v1131_v63 }
  0xf4   : > { %v1217_v4 = vpop.f32.mrf.mxu0 }
  0xf5   : > { %v570_v3 = vpop.f32.mrf.mxu1 }
  0xf6   : > { %v571_v5 = vadd.f32 %v570_v3, %v531_v2 }
  0xf7   : > { %v572_v6 = vpop.f32.mrf.mxu1 }
  0xf8   : > { %v873_v7 = vsel %vm259_vm2, %v571_v5, -inf }
  0xf9   : > { %v874_v8 = vrot.slane %v873_v7, 4  ;;  %v573_v9 = vpop.f32.mrf.mxu1 }
  0xfb   : > { %v875_v10 = vmax.f32 %v873_v7, %v874_v8  ;;  %v574_v12 = vpop.f32.mrf.mxu1 }
  0xfd   : > { %v876_v13 = vrot.slane %v875_v10, 2 }
  0xff   : > { %v877_v14 = vmax.f32 %v875_v10, %v876_v13 }
 0x101   : > { %v878_v16 = vrot.slane %v877_v14, 1 }
 0x103   : > { %v879_v18 = vmax.f32 %v877_v14, %v878_v16 }
 0x105   : > { %v880_v20 = vmax.f32 %v871_v17, %v879_v18 }
 0x107   : > { %v881_v21 = vsub.f32 %v871_v17, %v880_v20  ;;  %v888_v22 = vrot.slane %v880_v20, %v887_v19  ;;  %1032 = vst.msk [vmem:[#allocation2] sm:$0x1] %vm256_vm1, %v880_v20 }
 0x109   : > { %v882_v23 = vmul.f32 1.442695, %v881_v21  ;;  %v890_v24 = vsub.f32 %v571_v5, %v888_v22 }
 0x10b   : > { %1332 = vpow2.f32 %v882_v23  ;;  %v891_v25 = vmul.f32 1.442695, %v890_v24 }
 0x10d   : > { %1334 = vpow2.f32 %v891_v25 }
 0x10e   : > { %v1235_v26 = vpop.f32.mrf.mxu0 }
 0x110   : > { %v1236_v27 = vpop.f32.mrf.mxu0 }
 0x111   : > { %v1237_v31 = vadd.f32 %v1236_v27, %v1235_v26 }
 0x112   : > { %v1238_v28 = vpop.f32.mrf.mxu0 }
 0x113   : > { %v826_v37 = vadd.f32 %v1237_v31, %v1163_v32 }
 0x114   : > { %v1239_v29 = vpop.f32.mrf.mxu0 }
 0x118   : > { %v1333_v30 = vpop.eup %1332 }
 0x119   : > { %v911_v33 = vrot.slane %v1333_v30, %v887_v19  ;;  %v894_v48 = vmul.f32 %v1333_v30, %v893_v45 }
 0x11a   : > { %v1335_v34 = vpop.eup %1334 }
 0x11b   : > { %v895_v35 = vsel %vm259_vm2, %v1335_v34, 0.0  ;;  %1244 = vmatprep.subr.mxu0 %v1335_v34  ;;  %v914_v56 = vmul.f32 %v911_v33, %v906_v54  ;;  %v913_v59 = vmul.f32 %v911_v33, %v905_v55 }
 0x11c   : > { %v896_v36 = vrot.slane %v895_v35, 4  ;;  %1245 = vmatpush3.msra.mxu0 %v1335_v34 }
 0x11d   : > { %v865_v38 = vpop.f32.mrf.mxu1 }
 0x11e   : > { %v897_v39 = vadd.f32 %v896_v36, %v895_v35  ;;  %v866_v40 = vadd.f32 %v865_v38, %v826_v37 }
 0x11f   : > { %v867_v41 = vpop.f32.mrf.mxu1 }
 0x120   : > { %v898_v42 = vrot.slane %v897_v39, 2  ;;  %915 = vxpose.xlu0.b32.start.end [1/1] (short) (narrow) %v866_v40, 16 }
 0x121   : > { %v868_v43 = vpop.f32.mrf.mxu1 }
 0x122   : > { %v899_v44 = vadd.f32 %v898_v42, %v897_v39 }
 0x123   : > { %v869_v46 = vpop.f32.mrf.mxu1 }
 0x124   : > { %v900_v47 = vrot.slane %v899_v44, 1 }
 0x126   : > { %v901_v49 = vadd.f32 %v900_v47, %v899_v44 }
 0x128   : > { %v902_v50 = vadd.f32 %v901_v49, %v894_v48 }
 0x12a   : > { %904 = vst.msk [vmem:[#allocation3] sm:$0x1] %vm256_vm1, %v902_v50 }
 0x131   : > { %v1036_v53 = vld [vmem:[#allocation3] sm:$0x1] }
 0x132   : > { %1336 = vrcp.f32 %v1036_v53 }
 0x13f   : > { %v1337_v62 = vpop.eup %1336 }
 0x140   : > { %v1044_v63 = vrot.slane %v1337_v62, %v887_v19 }
 0x19c   : > { %v931_v51 = vpop.trf.xlu0 }
 0x19d   : > { %1246 = vmatprep.mubr.msk.f32.mxu0 %vm259_vm2, %v931_v51 }
 0x1a0   : > { %v932_v52 = vpop.trf.xlu0 }
 0x1a1   : > { %1247 = vmatmul.mubr.msk.f32.vlgmr.msra.gmra.mxu0 %vm259_vm2, %v932_v52 }
 0x261   : > { %v1248_v57 = vpop.f32.mrf.mxu0 }
 0x262   : > { %v1029_v58 = vadd.f32 %v1248_v57, %v914_v56 }
 0x263   : > { %v1019_v60 = vpop.f32.mrf.mxu0 }
 0x264   : > { %1031 = vst.msk [vmem:[#allocation4 + $0x8] sm:$0xff] %vm259_vm2, %v1029_v58  ;;  %v1028_v61 = vadd.f32 %v1019_v60, %v913_v59 }
 0x266   : > { %1030 = vst.msk [vmem:[#allocation4] sm:$0xff] %vm259_vm2, %v1028_v61 }
 0x26b   : > { %v1039_v0 = vld [vmem:[#allocation4 + $0x8] sm:$0xff] }
 0x26c   : > { %v1047_v1 = vmul.f32 %v1044_v63, %v1039_v0 }
 0x26d   : > { %v1038_v2 = vld [vmem:[#allocation4] sm:$0xff] }
 0x26e   : > { %1049 = vst.msk [vmem:[%s250_s9 + $0x8] sm:$0xff] %vm259_vm2, %v1047_v1  ;;  %v1046_v3 = vmul.f32 %v1044_v63, %v1038_v2 }
 0x270   : > { %1048 = vst.msk [vmem:[%s250_s9] sm:$0xff] %vm259_vm2, %v1046_v3 }
 0x271 PF: > { %s15_s20 = sadd.s32 1, %s1360_s20   ;;  %s1647_s18 = smov %s1356_s19 }
 0x272   : > { %p12_p5 = scmp.ge.s32.totalorder %s15_s20, 4   ;;  %s1648_s19 = smov %s1650_s21 }
 0x274   :  { %14 = sbr.rel (!%p12_p5) target bundleno = 2 (0x2), region = 78 }

</bundles_post_ra>
